<compile_context>
chip_gen: v7x
topology: tpu7x:2x2x1
jax: 0.10.0
libtpu: 0.0.40
codegen_flags: <defaults>
</compile_context>

<pallas_src>
import functools

import jax
import jax.numpy as jnp
from jax.experimental import pallas as pl
from jax.experimental.pallas import tpu as pltpu


def _layernorm_pre_kernel(x_ref, o_ref, *, eps: float, inv_d: float):
    # x_ref: (tile_rows, d_model) VMEM tile; normalize each row over d_model.
    x = x_ref[...].astype(jnp.float32)
    mean = jnp.sum(x, axis=-1, keepdims=True) * inv_d
    xc = x - mean
    # Centered second pass over data already in VMEM (free; kernel is HBM-bound)
    var = jnp.sum(xc * xc, axis=-1, keepdims=True) * inv_d
    inv_scale = jax.lax.rsqrt(var + eps)              # single EUP op
    o_ref[...] = (xc * inv_scale).astype(o_ref.dtype)


def _vmem_capacity_bytes() -> int:
    """Physical per-core VMEM; conservative (v7x) fallback if query fails."""
    try:
        return int(pltpu.get_tpu_info().vmem_capacity_bytes)
    except Exception:
        return 64 * 1024 * 1024


def _choose_tile_rows(rows: int, d_model: int, in_itemsize: int,
                      out_itemsize: int, vmem_capacity: int,
                      target_block_bytes: int = 8 * 1024 * 1024,
                      max_rows: int = 4096) -> int:
    """Pick a row-tile: ~8 MiB input blocks, bounded by the per-generation
    VMEM budget (2x in + 2x out pipeline buffers + ~3 f32 intermediates),
    multiple of 8, and leaving >= 2 grid steps when possible (v7x megacore)."""
    rows_rounded = ((rows + 7) // 8) * 8

    # Per-row VMEM footprint: double-buffered in/out + ~3 f32-width intermediates.
    per_row_bytes = d_model * (2 * in_itemsize + 2 * out_itemsize + 3 * 4)
    vmem_budget = int(0.75 * vmem_capacity)           # headroom for compiler scratch
    rows_from_vmem = max(8, vmem_budget // max(1, per_row_bytes))

    rows_from_target = max(8, target_block_bytes // max(1, d_model * in_itemsize))

    tr = min(rows_from_target, rows_from_vmem, max_rows)
    # Keep at least 2 grid steps so both v7x TensorCores get work.
    if rows_rounded >= 16:
        tr = min(tr, rows_rounded // 2)
    else:
        tr = min(tr, rows_rounded)
    tr = max(8, (tr // 8) * 8)
    return tr


def layernorm_pre(x, *, eps: float = 1e-5, out_dtype=None, tile_rows=None):
    """LayerNormPre forward. x: [..., d_model]. Returns same shape, dtype=out_dtype."""
    orig_shape = x.shape
    d_model = orig_shape[-1]
    rows = 1
    for s in orig_shape[:-1]:
        rows *= s
    if out_dtype is None:
        out_dtype = x.dtype

    x2d = x.reshape(rows, d_model)

    in_itemsize = jnp.dtype(x.dtype).itemsize
    out_itemsize = jnp.dtype(out_dtype).itemsize
    vmem_capacity = _vmem_capacity_bytes()

    if tile_rows is None:
        tile_rows = _choose_tile_rows(rows, d_model, in_itemsize, out_itemsize,
                                      vmem_capacity)

    # VMEM limit sized in lockstep with the tiles, never the full physical VMEM.
    in_block = tile_rows * d_model * in_itemsize
    out_block = tile_rows * d_model * out_itemsize
    f32_block = tile_rows * d_model * 4
    needed = 2 * in_block + 2 * out_block + 3 * f32_block + (4 << 20)
    vmem_limit = min(max(needed, 32 << 20), int(0.75 * vmem_capacity))

    grid = (pl.cdiv(rows, tile_rows),)
    out = pl.pallas_call(
        functools.partial(_layernorm_pre_kernel, eps=float(eps), inv_d=1.0 / d_model),
        out_shape=jax.ShapeDtypeStruct((rows, d_model), out_dtype),
        grid_spec=pltpu.PrefetchScalarGridSpec(
            num_scalar_prefetch=0,
            grid=grid,
            in_specs=[pl.BlockSpec((tile_rows, d_model), lambda i: (i, 0))],
            out_specs=pl.BlockSpec((tile_rows, d_model), lambda i: (i, 0)),
        ),
        compiler_params=pltpu.CompilerParams(
            dimension_semantics=("parallel",),
            vmem_limit_bytes=int(vmem_limit),
        ),
    )(x2d)

    return out.reshape(orig_shape)


def _reference(x, eps):
    x = x.astype(jnp.float32)
    x = x - jnp.mean(x, axis=-1, keepdims=True)
    scale = jnp.sqrt(jnp.mean(x * x, axis=-1, keepdims=True) + eps)
    return x / scale


if __name__ == "__main__":
    eps = 1e-5
    key = jax.random.PRNGKey(0)
    k1, k2, k3, k4, k5 = jax.random.split(key, 5)

    # [batch, pos, d_model]
    batch, pos, d_model = 2, 8, 128
    x = jax.random.normal(k1, (batch, pos, d_model), dtype=jnp.float32) * 3.0 + 0.5
    y = jax.block_until_ready(layernorm_pre(x, eps=eps))
    y_ref = _reference(x, eps)
    assert y.shape == x.shape
    assert y.dtype == jnp.float32
    assert jnp.allclose(y, y_ref, atol=1e-5, rtol=1e-5)

    # [batch, pos, head_index, d_model] form the module also accepts.
    x4 = jax.random.normal(k2, (2, 4, 3, 128), dtype=jnp.float32)
    y4 = jax.block_until_ready(layernorm_pre(x4, eps=eps))
    assert jnp.allclose(y4, _reference(x4, eps), atol=1e-5, rtol=1e-5)

    # Ragged grid (rows not a multiple of tile_rows): exercises masked edge block.
    xr = jax.random.normal(k3, (2, 123, 128), dtype=jnp.float32) * 2.0 - 1.0
    yr = jax.block_until_ready(layernorm_pre(xr, eps=eps, tile_rows=64))
    assert jnp.allclose(yr, _reference(xr, eps), atol=1e-5, rtol=1e-5)

    # Large-mean rows: centered variance stays accurate where E[x^2]-mean^2 would not.
    xm = jax.random.normal(k4, (2, 8, 128), dtype=jnp.float32) + 100.0
    ym = jax.block_until_ready(layernorm_pre(xm, eps=eps))
    assert jnp.allclose(ym, _reference(xm, eps), atol=1e-4, rtol=1e-4)

    # bf16 I/O path (cfg.dtype = bfloat16): compute in f32 inside the kernel,
    # cast only at the output, halving HBM traffic in production.
    xb = jax.random.normal(k5, (2, 8, 256), dtype=jnp.bfloat16)
    yb = jax.block_until_ready(layernorm_pre(xb, eps=eps, out_dtype=jnp.bfloat16))
    assert yb.dtype == jnp.bfloat16
    assert jnp.allclose(yb.astype(jnp.float32), _reference(xb, eps), atol=2e-2, rtol=2e-2)

    print("KERNEL_OK")
</pallas_src>

<mosaic_0001>
module attributes {stable_mosaic.version = 11 : i64} {
  func.func @_layernorm_pre_kernel(%arg0: i32, %arg1: memref<8x128xf32, #tpu.memory_space<vmem>>, %arg2: memref<8x128xf32, #tpu.memory_space<vmem>>) attributes {dimension_semantics = [#tpu.dimension_semantics<parallel>], iteration_bounds = array<i64: 2>, scalar_prefetch = 0 : i64, scratch_operands = 0 : i64, tpu.core_type = #tpu.core_type<tc>, window_params = [{transform_indices = @transform_0, window_bounds = array<i64: 8, 128>}, {transform_indices = @transform_1, window_bounds = array<i64: 8, 128>}]} {
    %c0 = arith.constant 0 : index
    %c0_0 = arith.constant 0 : index
    %0 = vector.load %arg1[%c0, %c0_0] : memref<8x128xf32, #tpu.memory_space<vmem>>, vector<8x128xf32>
    %cst = arith.constant dense<0.000000e+00> : vector<8xf32>
    %1 = vector.multi_reduction <add>, %0, %cst [1] : vector<8x128xf32> to vector<8xf32>
    %2 = vector.shape_cast %1 : vector<8xf32> to vector<8x1xf32>
    %cst_1 = arith.constant 7.812500e-03 : f32
    %3 = vector.broadcast %cst_1 : f32 to vector<8x1xf32>
    %4 = arith.mulf %2, %3 : vector<8x1xf32>
    %5 = vector.broadcast %4 : vector<8x1xf32> to vector<8x128xf32>
    %6 = arith.subf %0, %5 : vector<8x128xf32>
    %7 = arith.mulf %6, %6 : vector<8x128xf32>
    %cst_2 = arith.constant dense<0.000000e+00> : vector<8xf32>
    %8 = vector.multi_reduction <add>, %7, %cst_2 [1] : vector<8x128xf32> to vector<8xf32>
    %9 = vector.shape_cast %8 : vector<8xf32> to vector<8x1xf32>
    %cst_3 = arith.constant 7.812500e-03 : f32
    %10 = vector.broadcast %cst_3 : f32 to vector<8x1xf32>
    %11 = arith.mulf %9, %10 : vector<8x1xf32>
    %cst_4 = arith.constant 9.99999974E-6 : f32
    %12 = vector.broadcast %cst_4 : f32 to vector<8x1xf32>
    %13 = arith.addf %11, %12 : vector<8x1xf32>
    %14 = math.rsqrt %13 : vector<8x1xf32>
    %15 = vector.broadcast %14 : vector<8x1xf32> to vector<8x128xf32>
    %16 = arith.mulf %6, %15 : vector<8x128xf32>
    %c0_5 = arith.constant 0 : index
    %c0_6 = arith.constant 0 : index
    %17 = vector.load %arg2[%c0_5, %c0_6] : memref<8x128xf32, #tpu.memory_space<vmem>>, vector<8x128xf32>
    tpu.vector_store %arg2[%c0_5, %c0_6], %16 {strides = array<i32>} : memref<8x128xf32, #tpu.memory_space<vmem>>, vector<8x128xf32>,
    return
  }
  func.func @transform_0(%arg0: i32) -> (i32, i32) {
    %c0_i32 = arith.constant 0 : i32
    %c0_i32_0 = arith.constant 0 : i32
    return %arg0, %c0_i32 : i32, i32
  }
  func.func @transform_1(%arg0: i32) -> (i32, i32) {
    %c0_i32 = arith.constant 0 : i32
    %c0_i32_0 = arith.constant 0 : i32
    return %arg0, %c0_i32 : i32, i32
  }
}

</mosaic_0001>

<bundles_post_ra>
// kernel: tpu_custom_call.1
= control target key start
LH: loop header
LB: loop body
LE: loop exit
PB: predicated region body
PF: predicated region fallthrough
CT: control target
= control target key end

     0   :  { %6 = vsyncpa [#allocation3], 0  ;;  %s560_s0 = inlined_call_operand.hbm [shape: f32[16,128], index: 0, kind: input, shape index: {}]   ;;  %s561_s1 = inlined_call_operand.hbm [shape: f32[16,128], index: 1, kind: output, shape index: {}]  }
   0x1   :  { %8 = vsyncpa [#allocation3 + $0x1], 0 }
   0x2   :  { %9 = vsyncpa [#allocation4], 0 }
   0x3   :  { %11 = vsyncpa [#allocation4 + $0x1], 0  ;;  %s399_s6 = smov 0   ;;  %s401_s7 = smov 0  }
   0x4   :  { %s403_s8 = smov 0   ;;  %s405_s9 = smov 0  }
   0x5 LB: > { %s420_s10 = sadd.s32 4294967295, %s385_s9   ;;  %s229_s11 = sadd.s32 4294967294, %s385_s9   ;;  %s385_s9 = sphi %s405_s9, %s576_s9   ;;  %s381_s8 = sphi %s403_s8, %s575_s8   ;;  %s377_s7 = sphi %s401_s7, %s574_s7   ;;  %s373_s6 = sphi %s399_s6, %s573_s6  }
   0x6   : > { %s424_s12 = sadd.s32 1, %s385_s9   ;;  %s24_s13 = sadd.s32 1, %s381_s8 }
   0x7   : > { %s21_s14 = ssub.s32 %s385_s9, %s424_s12  ;;  %p31_p0 = scmp.ne.s32.totalorder %s381_s8, %s377_s7 }
   0x8   : > { %p22_p1 = scmp.eq.s32.totalorder %s21_s14, 0  ;;  %p32_p2 = scmp.eq.s32.totalorder %s385_s9, 0 }
   0x9   : > { %p37_p3 = scmp.ne.s32.totalorder %s377_s7, %s373_s6  ;;  %p38_p4 = scmp.eq.s32.totalorder %s420_s10, 0 }
   0xa   : > { %s436_s15 = scalar_select %p22_p1, %s381_s8, %s24_s13  }
   0xb   : > { %p438_p5 = por %p32_p2, %p31_p0  ;;  %p442_p6 = por %p38_p4, %p37_p3 }
   0xc   : > { %p61_p7 = scmp.eq.s32.totalorder %s420_s10, 1  ;;  %p67_p8 = scmp.eq.s32.totalorder %s229_s11, 1 }
   0xd   : > { %p253_p10 = scmp.lt.s32.totalorder %s385_s9, 2  ;;  %s87_s20 = sand.u32 1, %s381_s8  }
   0xe   : > { %p449_p11 = por %p61_p7, %p31_p0  ;;  %p453_p12 = por %p67_p8, %p37_p3 }
   0xf   : > { %s233_s21 = sshll.u32 %s385_s9, 7  ;;  %s232_s22 = sshll.u32 %s87_s20, 3 }
  0x10   : > { %s565_s18 = scalar_select %p449_p11, 1, 0 }
  0x11   : > { %s566_s19 = scalar_select %p453_p12, 1, 0 }
  0x12   : > { %s462_s25 = scalar_lea.hbm %s560_s0, %s233_s21  ;;  %s91_s26 = scalar_lea.vmem [#allocation2], %s232_s22 }
  0x13   : > { %s98_s27 = sshll.u32 %s91_s26, 4  ;;  %p466_p13 = pnand %p253_p10, %p438_p5  ;;  %s470_s27 = int_to_ptr.vmem [resolvable:$true] %s98_s27 }
  0x14   : > { %s88_s29 = scalar_lea.sflag [#allocation3], %s87_s20  ;;  %s289_s30 = scalar_lea.hbm %s462_s25, 128 }
  0x15   : > { %p290_p2 = scmp.ne.s32.totalorder %s462_s25, %s289_s30  ;;  %p291_p3 = pneg %p466_p13 }
  0x16   : > { %s294_s4 = scalar_lea.hbm %s560_s0, 256  ;;  %p295_p5 = scmp.lt.u32.totalorder %s462_s25, %s560_s0 }
  0x17   : > { %p292_p4 = pnand %p291_p3, %p290_p2  ;;  %p296_p8 = scmp.lt.u32.totalorder %s294_s4, %s289_s30 }
  0x18   : > { %p298_p9 = scmp.lt.u32.totalorder %s289_s30, %s462_s25 }
  0x19   : > { %p293_p7 = pneg %p292_p4  ;;  %p297_p10 = por %p296_p8, %p295_p5 }
  0x1b   : > { %p299_p0 = por %p298_p9, %p297_p10 }
  0x1d   : > { %p300_p1 = pnand %p299_p0, %p293_p7 }
  0x1f   : > { %303 = shalt.err (!%p300_p1)
}
  0x20   : > { %s304_s13 = scalar_lea.vmem %s470_s27, 128  ;;  %s387_s14 = smov [#allocation2]  }
  0x21   : > { %p305_p2 = scmp.ne.s32.totalorder %s470_s27, %s304_s13  ;;  %s309_s16 = sshll.u32 %s387_s14, 4  ;;  %s310_s16 = int_to_ptr.vmem [resolvable:$false] %s309_s16 }
  0x22   : > { %s311_s20 = scalar_lea.vmem %s310_s16, 256  ;;  %p312_p11 = scmp.lt.s32.totalorder %s470_s27, %s310_s16 }
  0x23   : > { %p307_p4 = pnand %p305_p2, %p291_p3  ;;  %p313_p5 = scmp.lt.s32.totalorder %s311_s20, %s304_s13 }
  0x25   : > { %p308_p12 = pneg %p307_p4  ;;  %p314_p8 = por %p313_p5, %p312_p11 }
  0x27   : > { %p315_p9 = pnand %p314_p8, %p308_p12 }
  0x29   : > { %318 = shalt.err (!%p315_p9)
}
  0x2a   : > { %248 = dma.hbm_to_vmem [thread:$0]  (!%p466_p13), %s462_s25, 128, %s470_s27, %s88_s29  }
  0x2b   : > { %p568_p0 = scmp.lt.s32.totalorder %s385_s9, 3  ;;  %p569_p1 = scmp.ge.s32.totalorder %s385_s9, 1 }
  0x2d   : > { %p104_p3 = pnand %p569_p1, %p568_p0 }
  0x2e   : > { %s504_s21 = sand.u32 (!%p104_p3), 1, %s377_s7  }
  0x2f   : > { %107 = sbr.rel (%p104_p3) target bundleno = 377 (0x179), region = 24  ;;  %s235_s22 = sshll.u32 (!%p104_p3), %s504_s21, 3 }
  0x30   : > { %s110_s23 = scalar_lea.sflag (!%p104_p3), [#allocation3], %s504_s21  ;;  %s113_s24 = scalar_lea.vmem (!%p104_p3), [#allocation2], %s235_s22 }
  0x36   : > { %364 = dma.done.wait (%p442_p6), %s110_s23, 128  }
  0x37   : > { %366 = vsyncadd (%p442_p6), %s110_s23, 4294967168  ;;  %v132_v0 = vld [vmem:[%s113_s24] sm:$0xff]  ;;  %s238_s25 = sshll.u32 %s420_s10, 7  ;;  %s131_s26 = scalar_lea.vmem [#allocation5], %s235_s22 }
  0x38   : > { %133 = vadd.xlane.f32.xlu0 %v132_v0  ;;  %s159_s27 = sshll.u32 %s131_s26, 4  ;;  %s516_s29 = scalar_lea.hbm %s561_s1, %s238_s25  ;;  %s518_s27 = int_to_ptr.vmem [resolvable:$true] %s159_s27 }
  0x39   : > { %s146_s30 = scalar_lea.sflag [#allocation4], %s504_s21  ;;  %s319_s2 = scalar_lea.vmem %s518_s27, 128 }
  0x3a   : > { %p320_p6 = scmp.ne.s32.totalorder %s518_s27, %s319_s2  ;;  %p570_p11 = scmp.ne.s32.totalorder %s565_s18, 0 }
  0x3b   : > { %s388_s10 = smov [#allocation5]  }
  0x3c   : > { %p321_p12 = pnand %p320_p6, %p570_p11  ;;  %s323_s3 = sshll.u32 %s388_s10, 4  ;;  %s324_s3 = int_to_ptr.vmem [resolvable:$false] %s323_s3 }
  0x3d   : > { %s325_s4 = scalar_lea.vmem %s324_s3, 256  ;;  %p326_p7 = scmp.lt.s32.totalorder %s518_s27, %s324_s3 }
  0x3e   : > { %p322_p13 = pneg %p321_p12  ;;  %p327_p10 = scmp.lt.s32.totalorder %s325_s4, %s319_s2 }
  0x40   : > { %p328_p2 = por %p327_p10, %p326_p7 }
  0x42   : > { %p329_p4 = pnand %p328_p2, %p322_p13 }
  0xc5   : > { %v134_v1 = vpop.xlane.xlu0 %133 }
  0xc6   : > { %v135_v2 = vmul.f32 0.0078125, %v134_v1 }
  0xc8   : > { %v136_v3 = vsub.f32 %v132_v0, %v135_v2 }
  0xca   : > { %v137_v4 = vmul.f32 %v136_v3, %v136_v3 }
  0xcc   : > { %138 = vadd.xlane.f32.xlu0 %v137_v4 }
 0x159   : > { %v139_v5 = vpop.xlane.xlu0 %138 }
 0x15a   : > { %v140_v6 = vmul.f32 0.0078125, %v139_v5 }
 0x15c   : > { %v141_v7 = vadd.f32 1e-05, %v140_v6 }
 0x15e   : > { %287 = vrsqrt.f32 %v141_v7 }
 0x168   : > { %v288_v8 = vpop.eup %287 }
 0x169   : > { %v143_v9 = vmul.f32 %v288_v8, %v136_v3 }
 0x16b   : > { %144 = vst [vmem:[%s131_s26] sm:$0xff] %v143_v9 }
 0x16c   : > { %332 = shalt.err (!%p329_p4)
}
 0x16d   : > { %s333_s5 = scalar_lea.hbm %s516_s29, 128  ;;  %s337_s14 = scalar_lea.hbm %s561_s1, 256 }
 0x16e   : > { %p334_p5 = scmp.ne.s32.totalorder %s516_s29, %s333_s5  ;;  %p338_p0 = scmp.lt.u32.totalorder %s516_s29, %s561_s1 }
 0x16f   : > { %p339_p1 = scmp.lt.u32.totalorder %s337_s14, %s333_s5  ;;  %p341_p6 = scmp.lt.u32.totalorder %s333_s5, %s516_s29 }
 0x170   : > { %p335_p8 = pnand %p334_p5, %p570_p11 }
 0x171   : > { %p340_p3 = por %p339_p1, %p338_p0 }
 0x172   : > { %p336_p9 = pneg %p335_p8 }
 0x173   : > { %p342_p12 = por %p341_p6, %p340_p3 }
 0x175   : > { %p343_p13 = pnand %p342_p12, %p336_p9 }
 0x177   : > { %346 = shalt.err (!%p343_p13)
}
 0x178   : > { %243 = dma.vmem_to_hbm [thread:$0]  (%p570_p11), %s518_s27, 128, %s516_s29, %s146_s30  }
 0x179 PF: > { %s171_s21 = sand.u32 1, %s373_s6   ;;  %p571_p7 = scmp.ne.s32.totalorder %s566_s19, 0 }
 0x17a   : > { %p572_p10 = scmp.ge.s32.totalorder %s385_s9, 2  ;;  %s172_s22 = scalar_lea.sflag [#allocation4], %s171_s21 }
 0x17c   : > { %p250_p2 = pnand %p572_p10, %p571_p7 }
 0x17e   : > { %368 = dma.done.wait (!%p250_p2), %s172_s22, 128  }
 0x17f   : > { %370 = vsyncadd (!%p250_p2), %s172_s22, 4294967168  ;;  %p14_p4 = scmp.ge.s32.totalorder %s424_s12, 4   ;;  %s573_s6 = smov %s377_s7 }
 0x180   : > { %s574_s7 = smov %s381_s8  ;;  %s575_s8 = smov %s436_s15 }
 0x181   : > { %s576_s9 = smov %s424_s12  ;;  %16 = sbr.rel (!%p14_p4) target bundleno = 5 (0x5), region = 69 }
 0x188   :  { %177 = vsyncpa [#allocation3], 1 }
 0x189   :  { %179 = vsyncpa [#allocation3 + $0x1], 1 }
 0x18a   :  { %180 = vsyncpa [#allocation4], 1 }
 0x18b   :  { %182 = vsyncpa [#allocation4 + $0x1], 1 }

</bundles_post_ra>
